<compile_context>
chip_gen: v7x
topology: tpu7x:2x2x1
jax: 0.10.0
libtpu: 0.0.40
codegen_flags: <defaults>
</compile_context>

<pallas_src>
import jax
import jax.numpy as jnp
from jax import lax
from jax.experimental import pallas as pl
from jax.experimental.pallas import tpu as pltpu


def _residual_kernel(patches_ref, xres_ref, w1_ref, w2_ref, o_ref):
    """One (batch, M-block) tile per grid step.  Everything channel-major.

    patches_ref : (9*Cin, Mb)   bf16  -- im2col slab of ReLU(x) (built in wrapper)
    xres_ref    : (Cin,  Mb)    f32   -- original x (residual add)
    w1_ref      : (Cres, 9*Cin) bf16  -- 3x3 conv weights, (O, KH*KW*I) flattened
    w2_ref      : (Chid, Cres)  bf16  -- 1x1 conv weights (OI)
    o_ref       : (Chid, Mb)    f32   -- channel-major output (lane-dense store)
    """
    # 3x3 conv (pad=1, no bias): single MXU matmul, big M on the lane/N axis.
    acc = jnp.dot(w1_ref[...], patches_ref[...],
                  preferred_element_type=jnp.float32)            # (Cres, Mb) f32
    # ReLU (VPU, free under a mem-bound bundle) + 1x1 conv (no bias).
    h = jnp.maximum(acc, 0.0).astype(jnp.bfloat16)               # (Cres, Mb) bf16
    y = jnp.dot(w2_ref[...], h,
                preferred_element_type=jnp.float32)              # (Chid, Mb) f32
    # Residual add; output last dim is a multiple of 128 -> unmasked vst.
    o_ref[...] = xres_ref[...] + y


def _pick_m_block(hw, target=512):
    """Largest multiple-of-128 divisor of hw that is <= target, else hw."""
    if hw <= target:
        return hw
    for mb in range(target, 127, -128):
        if hw % mb == 0:
            return mb
    return hw


def residual_forward(x_nchw, w_conv3, w_conv1, *, m_block=None):
    """Pallas implementation of Residual.forward.

    x_nchw : (B, Cin, H, W)      float32  (PyTorch layout)
    w_conv3: (Cres, Cin, 3, 3)   float32  (PyTorch OIHW)
    w_conv1: (Chid, Cres, 1, 1)  float32  (PyTorch OIHW)
    returns: (B, Chid, H, W)     float32  (requires Cin == Chid, as in PyTorch)
    """
    B, Cin, H, W = x_nchw.shape
    Cres = w_conv3.shape[0]
    Chid = w_conv1.shape[0]
    assert Cin == Chid, "residual add requires in_channels == num_hiddens"
    HW = H * W

    mb = _pick_m_block(HW) if m_block is None else m_block
    assert HW % mb == 0, "m_block must divide H*W"

    x = x_nchw.astype(jnp.float32)

    # --- wrapper-side im2col: one fused XLA producer pass, emitted in bf16 ------
    xp = jnp.pad(jnp.maximum(x, 0.0).astype(jnp.bfloat16),
                 ((0, 0), (0, 0), (1, 1), (1, 1)))                # (B,Cin,H+2,W+2)
    windows = [xp[:, :, dy:dy + H, dx:dx + W]                     # (B,Cin,H,W)
               for dy in range(3) for dx in range(3)]
    patches = jnp.stack(windows, axis=1).reshape(B, 9 * Cin, HW)  # (B,9*Cin,HW)

    # Residual term: pure reshape of contiguous NCHW (no transpose / HBM copy).
    xres = x.reshape(B, Cin, HW)

    # OIHW -> (O, KH*KW*I): column (dy*3+dx)*Cin + c matches the slab row order.
    w1 = jnp.transpose(w_conv3, (0, 2, 3, 1)).reshape(Cres, 9 * Cin).astype(jnp.bfloat16)
    w2 = w_conv1[:, :, 0, 0].astype(jnp.bfloat16)                 # (Chid, Cres)

    # --- explicit VMEM budget: double-buffered blocks + weights + headroom ------
    blk_bytes = (9 * Cin * mb * 2) + (Cin * mb * 4) + (Chid * mb * 4)
    w_bytes = Cres * 9 * Cin * 2 + Chid * Cres * 2
    vmem_limit = int(min(max(4 * blk_bytes + 2 * w_bytes + (4 << 20), 16 << 20),
                         48 << 20))

    out = pl.pallas_call(
        _residual_kernel,
        out_shape=jax.ShapeDtypeStruct((B, Chid, HW), jnp.float32),
        grid_spec=pltpu.PrefetchScalarGridSpec(
            num_scalar_prefetch=0,
            grid=(B, HW // mb),
            in_specs=[
                pl.BlockSpec((None, 9 * Cin, mb), lambda b, m: (b, 0, m)),
                pl.BlockSpec((None, Cin, mb), lambda b, m: (b, 0, m)),
                pl.BlockSpec((Cres, 9 * Cin), lambda b, m: (0, 0)),
                pl.BlockSpec((Chid, Cres), lambda b, m: (0, 0)),
            ],
            out_specs=pl.BlockSpec((None, Chid, mb), lambda b, m: (b, 0, m)),
        ),
        compiler_params=pltpu.CompilerParams(
            dimension_semantics=("parallel", "parallel"),
            vmem_limit_bytes=vmem_limit),
    )(patches, xres, w1, w2)

    # (B, Chid, H*W) -> (B, Chid, H, W): pure reshape, no transpose.
    return out.reshape(B, Chid, H, W)


def _reference_forward(x_nchw, w_conv3, w_conv1):
    """Plain-JAX reference matching PyTorch semantics (for verification)."""
    h = jnp.maximum(x_nchw, 0.0)
    h = lax.conv_general_dilated(
        h, w_conv3, window_strides=(1, 1), padding=((1, 1), (1, 1)),
        dimension_numbers=("NCHW", "OIHW", "NCHW"),
        precision=lax.Precision.HIGHEST)
    h = jnp.maximum(h, 0.0)
    h = lax.conv_general_dilated(
        h, w_conv1, window_strides=(1, 1), padding=((0, 0), (0, 0)),
        dimension_numbers=("NCHW", "OIHW", "NCHW"),
        precision=lax.Precision.HIGHEST)
    return x_nchw + h


if __name__ == "__main__":
    # Residual(in_channels=32, num_hiddens=32, num_residual_hiddens=16)
    B, Cin, H, W = 2, 32, 16, 16
    num_hiddens, num_residual_hiddens = 32, 16

    key = jax.random.PRNGKey(0)
    kx, k1, k2 = jax.random.split(key, 3)
    x = jax.random.normal(kx, (B, Cin, H, W), dtype=jnp.float32)
    w_conv3 = jax.random.normal(
        k1, (num_residual_hiddens, Cin, 3, 3), dtype=jnp.float32) * 0.1
    w_conv1 = jax.random.normal(
        k2, (num_hiddens, num_residual_hiddens, 1, 1), dtype=jnp.float32) * 0.1

    fwd = jax.jit(residual_forward)
    out = jax.block_until_ready(fwd(x, w_conv3, w_conv1))
    ref = jax.block_until_ready(_reference_forward(x, w_conv3, w_conv1))

    assert out.shape == (B, num_hiddens, H, W)
    max_err = float(jnp.max(jnp.abs(out - ref)))
    # bf16 MXU inputs with f32 accumulation -> relaxed tolerance vs f32 reference.
    assert max_err < 5e-2, f"max abs err {max_err}"

    print("KERNEL_OK")
</pallas_src>

<mosaic_0001>
module attributes {stable_mosaic.version = 11 : i64} {
  func.func @_residual_kernel(%arg0: i32, %arg1: i32, %arg2: memref<1x288x256xbf16, #tpu.memory_space<vmem>>, %arg3: memref<1x32x256xf32, #tpu.memory_space<vmem>>, %arg4: memref<16x288xbf16, #tpu.memory_space<vmem>>, %arg5: memref<32x16xbf16, #tpu.memory_space<vmem>>, %arg6: memref<1x32x256xf32, #tpu.memory_space<vmem>>) attributes {dimension_semantics = [#tpu.dimension_semantics<parallel>, #tpu.dimension_semantics<parallel>], iteration_bounds = array<i64: 2, 1>, scalar_prefetch = 0 : i64, scratch_operands = 0 : i64, tpu.core_type = #tpu.core_type<tc>, window_params = [{transform_indices = @transform_0, window_bounds = array<i64: 1, 288, 256>}, {transform_indices = @transform_1, window_bounds = array<i64: 1, 32, 256>}, {pipeline_mode = #tpu.pipeline_mode<synchronous>, transform_indices = @transform_2, window_bounds = array<i64: 16, 288>}, {pipeline_mode = #tpu.pipeline_mode<synchronous>, transform_indices = @transform_3, window_bounds = array<i64: 32, 16>}, {transform_indices = @transform_4, window_bounds = array<i64: 1, 32, 256>}]} {
    %c0 = arith.constant 0 : index
    %c0_0 = arith.constant 0 : index
    %0 = vector.load %arg4[%c0, %c0_0] : memref<16x288xbf16, #tpu.memory_space<vmem>>, vector<16x288xbf16>
    %c0_1 = arith.constant 0 : index
    %c0_2 = arith.constant 0 : index
    %c0_3 = arith.constant 0 : index
    %1 = vector.load %arg2[%c0_1, %c0_2, %c0_3] : memref<1x288x256xbf16, #tpu.memory_space<vmem>>, vector<1x288x256xbf16>
    %2 = vector.shape_cast %1 : vector<1x288x256xbf16> to vector<288x256xbf16>
    %cst = arith.constant dense<0.000000e+00> : vector<16x256xf32>
    %3 = tpu.matmul %0, %2, %cst {dimension_numbers = #tpu.dot_dimension_numbers<[1], [0], [0], [1], [0, 0, 1, 1], [], []>} : vector<16x288xbf16>, vector<288x256xbf16>, vector<16x256xf32> -> vector<16x256xf32>
    %cst_4 = arith.constant 0.000000e+00 : f32
    %4 = vector.broadcast %cst_4 : f32 to vector<16x256xf32>
    %5 = arith.maximumf %3, %4 : vector<16x256xf32>
    %6 = arith.truncf %5 : vector<16x256xf32> to vector<16x256xbf16>
    %c0_5 = arith.constant 0 : index
    %c0_6 = arith.constant 0 : index
    %7 = vector.load %arg5[%c0_5, %c0_6] : memref<32x16xbf16, #tpu.memory_space<vmem>>, vector<32x16xbf16>
    %cst_7 = arith.constant dense<0.000000e+00> : vector<32x256xf32>
    %8 = tpu.matmul %7, %6, %cst_7 {dimension_numbers = #tpu.dot_dimension_numbers<[1], [0], [0], [1], [0, 0, 1, 1], [], []>} : vector<32x16xbf16>, vector<16x256xbf16>, vector<32x256xf32> -> vector<32x256xf32>
    %c0_8 = arith.constant 0 : index
    %c0_9 = arith.constant 0 : index
    %c0_10 = arith.constant 0 : index
    %9 = vector.load %arg3[%c0_8, %c0_9, %c0_10] : memref<1x32x256xf32, #tpu.memory_space<vmem>>, vector<1x32x256xf32>
    %10 = vector.shape_cast %9 : vector<1x32x256xf32> to vector<32x256xf32>
    %11 = arith.addf %10, %8 : vector<32x256xf32>
    %c0_11 = arith.constant 0 : index
    %c0_12 = arith.constant 0 : index
    %c0_13 = arith.constant 0 : index
    %12 = vector.load %arg6[%c0_11, %c0_12, %c0_13] : memref<1x32x256xf32, #tpu.memory_space<vmem>>, vector<1x32x256xf32>
    %13 = vector.shape_cast %12 : vector<1x32x256xf32> to vector<32x256xf32>
    %14 = vector.shape_cast %11 : vector<32x256xf32> to vector<1x32x256xf32>
    tpu.vector_store %arg6[%c0_11, %c0_12, %c0_13], %14 {strides = array<i32>} : memref<1x32x256xf32, #tpu.memory_space<vmem>>, vector<1x32x256xf32>,
    return
  }
  func.func @transform_0(%arg0: i32, %arg1: i32) -> (i32, i32, i32) {
    %c0_i32 = arith.constant 0 : i32
    %c0_i32_0 = arith.constant 0 : i32
    return %arg0, %c0_i32, %arg1 : i32, i32, i32
  }
  func.func @transform_1(%arg0: i32, %arg1: i32) -> (i32, i32, i32) {
    %c0_i32 = arith.constant 0 : i32
    %c0_i32_0 = arith.constant 0 : i32
    return %arg0, %c0_i32, %arg1 : i32, i32, i32
  }
  func.func @transform_2(%arg0: i32, %arg1: i32) -> (i32, i32) {
    %c0_i32 = arith.constant 0 : i32
    %c0_i32_0 = arith.constant 0 : i32
    %c0_i32_1 = arith.constant 0 : i32
    return %c0_i32, %c0_i32_0 : i32, i32
  }
  func.func @transform_3(%arg0: i32, %arg1: i32) -> (i32, i32) {
    %c0_i32 = arith.constant 0 : i32
    %c0_i32_0 = arith.constant 0 : i32
    %c0_i32_1 = arith.constant 0 : i32
    return %c0_i32, %c0_i32_0 : i32, i32
  }
  func.func @transform_4(%arg0: i32, %arg1: i32) -> (i32, i32, i32) {
    %c0_i32 = arith.constant 0 : i32
    %c0_i32_0 = arith.constant 0 : i32
    return %arg0, %c0_i32, %arg1 : i32, i32, i32
  }
}

</mosaic_0001>

<bundles_post_ra>
// kernel: residual_forward.1
= control target key start
LH: loop header
LB: loop body
LE: loop exit
PB: predicated region body
PF: predicated region fallthrough
CT: control target
= control target key end

     0   :  { %s1006_s15 = smov 0   ;;  %s1008_s16 = smov 0   ;;  %s1102_s0 = inlined_call_operand.vmem [shape: bf16[2,288,256], index: 0, kind: input, shape index: {}]   ;;  %s1103_s1 = inlined_call_operand.vmem [shape: f32[2,32,256], index: 1, kind: input, shape index: {}]   ;;  %s1104_s2 = inlined_call_operand.vmem [shape: bf16[16,288], index: 2, kind: input, shape index: {}]   ;;  %s1105_s3 = inlined_call_operand.vmem [shape: bf16[32,16], index: 3, kind: input, shape index: {}]   ;;  %s1106_s4 = inlined_call_operand.vmem [shape: f32[2,32,256], index: 4, kind: output, shape index: {}]  }
   0x1   :  { %s1010_s17 = smov 0  }
   0x2 LB: > { %s26_s18 = sadd.s32 1, %s974_s16  ;;  %p812_p0 = scmp.ge.s32.totalorder %s978_s17, 1  ;;  %s978_s17 = sphi %s1010_s17, %s14_s17   ;;  %s974_s16 = sphi %s1008_s16, %s1108_s16   ;;  %s970_s15 = sphi %s1006_s15, %s1107_s15  }
   0x3   : > { %p28_p1 = scmp.ge.s32.totalorder %s26_s18, 2  ;;  %p200_p2 = scmp.lt.s32.totalorder %s978_s17, 3 }
   0x5   : > { %s1110_s18 = smov (%p28_p1, %s26_s18), 0  ;;  %p201_p3 = pnand %p812_p0, %p200_p2 }
   0x6   : > { %p244_p4 = scmp.lt.s32.totalorder (!%p201_p3), %s970_s15, 1  ;;  %v980_v0 = vmov (!%p201_p3), 0   ;;  %v953_v1 = vld [vmem:[%s1104_s2 + $0x4] ss:$12 sps:$4 sm:$0xff] (!%p201_p3)   ;;  %v950_v21 = vld [vmem:[%s1104_s2 + $0x8] ss:$12 sps:$4 sm:$0xff] (!%p201_p3)  }
   0x7   : > { %204 = sbr.rel (%p201_p3) target bundleno = 534 (0x216), region = 36  ;;  %588 = vmatprep.mubr.bf16.mxu1 (!%p201_p3), %v980_v0  ;;  %545 = vmatprep.mubr.bf16.mxu0 (!%p201_p3), %v953_v1  ;;  %vm509_vm0 = vcmask (!%p201_p3), 261120   ;;  %v951_v39 = vld [vmem:[%s1104_s2] ss:$12 sps:$4 sm:$0xff] (!%p201_p3)   ;;  %vm619_vm1 = vcmask (!%p201_p3), 130048  }
   0x8   : > { %v954_v58 = vld [vmem:[%s1105_s3] sm:$0xff] (!%p201_p3)   ;;  %v955_v59 = vld [vmem:[%s1105_s3 + $0x8] sm:$0xff] (!%p201_p3)  }
   0xe   : > { %s1112_s15 = smov (!%p244_p4, %s970_s15), 1 }
   0xf   : > { %s870_s21 = smul.u32 288, %s1112_s15  ;;  %s864_s7 = sshll.u32 %s1112_s15, 6 }
  0x10   : > { %s261_s10 = scalar_lea.vmem %s1103_s1, %s864_s7  ;;  %s271_s13 = scalar_lea.vmem %s1106_s4, %s864_s7 }
  0x11   : > { %s1034_s24 = scalar_lea.vmem %s1102_s0, %s870_s21  ;;  %v679_v60 = vld [vmem:[%s261_s10] sm:$0xff]  ;;  %v680_v61 = vld [vmem:[%s261_s10 + $0x8] sm:$0xff]  ;;  %v681_v63 = vld [vmem:[%s261_s10 + $0x10] sm:$0xff] }
  0x12   : > { %v896_v2 = vld [vmem:[%s1034_s24 + $0x4] ss:$8 sps:$4 sm:$0xff]   ;;  %v898_v3 = vld [vmem:[%s1034_s24] ss:$8 sps:$4 sm:$0xff]   ;;  %v899_v4 = vld [vmem:[%s1034_s24 + $0x14] ss:$8 sps:$4 sm:$0xff]  }
  0x13   : > { %513 = vmatprep.subr.bf16.mxu0 %v896_v2  ;;  %v901_v5 = vld [vmem:[%s1034_s24 + $0x10] ss:$8 sps:$4 sm:$0xff]   ;;  %v902_v6 = vld [vmem:[%s1034_s24 + $0x24] ss:$8 sps:$4 sm:$0xff]   ;;  %v904_v7 = vld [vmem:[%s1034_s24 + $0x20] ss:$8 sps:$4 sm:$0xff]  }
  0x14   : > { %514 = vmatpush1.bf16.msra.mxu0 %v898_v3  ;;  %v905_v8 = vld [vmem:[%s1034_s24 + $0x34] ss:$8 sps:$4 sm:$0xff]   ;;  %v907_v9 = vld [vmem:[%s1034_s24 + $0x30] ss:$8 sps:$4 sm:$0xff]   ;;  %v908_v10 = vld [vmem:[%s1034_s24 + $0x44] ss:$8 sps:$4 sm:$0xff]  }
  0x15   : > { %515 = vmatprep.subr.bf16.mxu0 %v899_v4  ;;  %v910_v11 = vld [vmem:[%s1034_s24 + $0x40] ss:$8 sps:$4 sm:$0xff]   ;;  %v911_v12 = vld [vmem:[%s1034_s24 + $0x54] ss:$8 sps:$4 sm:$0xff]   ;;  %v913_v13 = vld [vmem:[%s1034_s24 + $0x50] ss:$8 sps:$4 sm:$0xff]  }
  0x16   : > { %v938_v14 = vld [vmem:[%s1034_s24 + $0x104] ss:$8 sps:$4 sm:$0xff]   ;;  %v940_v15 = vld [vmem:[%s1034_s24 + $0x100] ss:$8 sps:$4 sm:$0xff]   ;;  %v944_v17 = vld [vmem:[%s1034_s24 + $0x114] ss:$8 sps:$4 sm:$0xff]  }
  0x17   : > { %v914_v16 = vld [vmem:[%s1034_s24 + $0x64] ss:$8 sps:$4 sm:$0xff]   ;;  %556 = vmatprep.subr.bf16.mxu1 %v938_v14  ;;  %v946_v18 = vld [vmem:[%s1034_s24 + $0x110] ss:$8 sps:$4 sm:$0xff]   ;;  %v916_v19 = vld [vmem:[%s1034_s24 + $0x60] ss:$8 sps:$4 sm:$0xff]  }
  0x18   : > { %516 = vmatpush1.bf16.msra.mxu0 %v901_v5  ;;  %557 = vmatpush1.bf16.msra.mxu1 %v940_v15  ;;  %v917_v20 = vld [vmem:[%s1034_s24 + $0x74] ss:$8 sps:$4 sm:$0xff]   ;;  %v919_v22 = vld [vmem:[%s1034_s24 + $0x70] ss:$8 sps:$4 sm:$0xff]   ;;  %v920_v23 = vld [vmem:[%s1034_s24 + $0x84] ss:$8 sps:$4 sm:$0xff]  }
  0x19   : > { %517 = vmatprep.subr.bf16.mxu0 %v902_v6  ;;  %558 = vmatprep.subr.bf16.mxu1 %v944_v17  ;;  %v922_v24 = vld [vmem:[%s1034_s24 + $0x80] ss:$8 sps:$4 sm:$0xff]   ;;  %v923_v25 = vld [vmem:[%s1034_s24 + $0x94] ss:$8 sps:$4 sm:$0xff]   ;;  %v925_v26 = vld [vmem:[%s1034_s24 + $0x90] ss:$8 sps:$4 sm:$0xff]  }
  0x1a   : > { %v926_v27 = vld [vmem:[%s1034_s24 + $0xa4] ss:$8 sps:$4 sm:$0xff]   ;;  %v928_v28 = vld [vmem:[%s1034_s24 + $0xa0] ss:$8 sps:$4 sm:$0xff]   ;;  %v929_v29 = vld [vmem:[%s1034_s24 + $0xb4] ss:$8 sps:$4 sm:$0xff]  }
  0x1b   : > { %v931_v30 = vld [vmem:[%s1034_s24 + $0xb0] ss:$8 sps:$4 sm:$0xff]   ;;  %v932_v31 = vld [vmem:[%s1034_s24 + $0xc4] ss:$8 sps:$4 sm:$0xff]   ;;  %v934_v32 = vld [vmem:[%s1034_s24 + $0xc0] ss:$8 sps:$4 sm:$0xff]  }
  0x1c   : > { %518 = vmatpush1.bf16.msra.mxu0 %v904_v7  ;;  %559 = vmatpush1.bf16.msra.mxu1 %v946_v18  ;;  %v935_v33 = vld [vmem:[%s1034_s24 + $0xd4] ss:$8 sps:$4 sm:$0xff]   ;;  %v937_v34 = vld [vmem:[%s1034_s24 + $0xd0] ss:$8 sps:$4 sm:$0xff]   ;;  %v941_v35 = vld [vmem:[%s1034_s24 + $0xe4] ss:$8 sps:$4 sm:$0xff]  }
  0x1d   : > { %519 = vmatprep.subr.bf16.mxu0 %v905_v8  ;;  %v943_v36 = vld [vmem:[%s1034_s24 + $0xe0] ss:$8 sps:$4 sm:$0xff]   ;;  %v947_v37 = vld [vmem:[%s1034_s24 + $0xf4] ss:$8 sps:$4 sm:$0xff]   ;;  %v949_v38 = vld [vmem:[%s1034_s24 + $0xf0] ss:$8 sps:$4 sm:$0xff]  }
  0x1e   : > { %v682_v2 = vld [vmem:[%s261_s10 + $0x18] sm:$0xff]  ;;  %v683_v8 = vld [vmem:[%s261_s10 + $0x20] sm:$0xff] }
  0x1f   : > { %857 = vmatmul.mubr.msk.bf16.vlgmr.msra.gmra.mrb[0].mxu1 %vm509_vm0, %v950_v21  ;;  %v686_v14 = vld [vmem:[%s261_s10 + $0x38] sm:$0xff] }
  0x20   : > { %520 = vmatpush1.bf16.msra.mxu0 %v907_v9  ;;  %658 = vmatprep.mubr.bf16.mxu1 %v980_v0  ;;  %v684_v9 = vld [vmem:[%s261_s10 + $0x28] sm:$0xff] }
  0x21   : > { %521 = vmatprep.subr.bf16.mxu0 %v908_v10 }
  0x24   : > { %522 = vmatpush1.bf16.msra.mxu0 %v910_v11  ;;  %v685_v11 = vld [vmem:[%s261_s10 + $0x30] sm:$0xff] }
  0x25   : > { %523 = vmatprep.subr.bf16.mxu0 %v911_v12 }
  0x28   : > { %524 = vmatpush1.bf16.msra.mxu0 %v913_v13 }
  0x29   : > { %525 = vmatprep.subr.bf16.mxu0 %v914_v16 }
  0x2c   : > { %526 = vmatpush1.bf16.msra.mxu0 %v916_v19 }
  0x2d   : > { %527 = vmatprep.subr.bf16.mxu0 %v917_v20 }
  0x30   : > { %528 = vmatpush1.bf16.msra.mxu0 %v919_v22 }
  0x31   : > { %529 = vmatprep.subr.bf16.mxu0 %v920_v23 }
  0x34   : > { %530 = vmatpush1.bf16.msra.mxu0 %v922_v24 }
  0x35   : > { %531 = vmatprep.subr.bf16.mxu0 %v923_v25 }
  0x38   : > { %532 = vmatpush1.bf16.msra.mxu0 %v925_v26 }
  0x39   : > { %533 = vmatprep.subr.bf16.mxu0 %v926_v27 }
  0x3c   : > { %534 = vmatpush1.bf16.msra.mxu0 %v928_v28 }
  0x3d   : > { %535 = vmatprep.subr.bf16.mxu0 %v929_v29 }
  0x40   : > { %536 = vmatpush1.bf16.msra.mxu0 %v931_v30 }
  0x41   : > { %537 = vmatprep.subr.bf16.mxu0 %v932_v31 }
  0x44   : > { %538 = vmatpush1.bf16.msra.mxu0 %v934_v32 }
  0x45   : > { %539 = vmatprep.subr.bf16.mxu0 %v935_v33 }
  0x48   : > { %540 = vmatpush1.bf16.msra.mxu0 %v937_v34 }
  0x49   : > { %541 = vmatprep.subr.bf16.mxu0 %v941_v35 }
  0x4c   : > { %542 = vmatpush1.bf16.msra.mxu0 %v943_v36 }
  0x4d   : > { %543 = vmatprep.subr.bf16.mxu0 %v947_v37 }
  0x50   : > { %544 = vmatpush1.bf16.msra.mxu0 %v949_v38 }
  0x53   : > { %546 = vmatmul.mubr.bf16.vlgmr.msra.gmra.mrb[0].mxu0 %v951_v39 }
  0xf2   : > { %v590_v40 = vpop.f32.mrb[0].mxu1 }
  0xf3   : > { %v592_v41 = vpop.f32.mrb[1].mxu1 }
  0xf4   : > { %v594_v42 = vpop.f32.mrb[2].mxu1 }
  0xf5   : > { %v596_v43 = vpop.f32.mrb[3].mxu1 }
 0x126   : > { %v547_v44 = vpop.f32.mrb[0].mxu0 }
 0x127   : > { %v591_v45 = vadd.f32 %v590_v40, %v547_v44  ;;  %v549_v46 = vpop.f32.mrb[1].mxu0 }
 0x128   : > { %v593_v47 = vadd.f32 %v592_v41, %v549_v46  ;;  %v551_v48 = vpop.f32.mrb[2].mxu0 }
 0x129   : > { %v595_v49 = vadd.f32 %v594_v42, %v551_v48  ;;  %v553_v50 = vpop.f32.mrb[3].mxu0  ;;  %v599_v52 = vmax.f32 %v591_v45, 0.0 }
 0x12a   : > { %v597_v51 = vadd.f32 %v596_v43, %v553_v50  ;;  %v600_v54 = vmax.f32 %v593_v47, 0.0 }
 0x12b   : > { %v601_v53 = vmax.f32 %v595_v49, 0.0 }
 0x12c   : > { %v602_v55 = vmax.f32 %v597_v51, 0.0 }
 0x12d   : > { %v603_v56 = vpack.c.bf16 %v601_v53, %v599_v52 }
 0x12e   : > { %v604_v57 = vpack.c.bf16 %v602_v55, %v600_v54 }
 0x130   : > { %626 = vmatprep.subr.bf16.mxu1 %v604_v57 }
 0x131   : > { %627 = vmatpush1.bf16.msra.mxu1 %v603_v56 }
 0x134   : > { %860 = vmatmul.mubr.msk.bf16.vlgmr.msra.gmra.mrb[4].mxu1 %vm619_vm1, %v954_v58 }
 0x135   : > { %668 = vmatprep.mubr.bf16.mxu1 %v980_v0 }
 0x13c   : > { %861 = vmatmul.mubr.msk.bf16.gmra.mrb[8].mxu1 %vm619_vm1, %v955_v59 }
 0x207   : > { %v660_v62 = vpop.f32.mrb[4].mxu1 }
 0x208   : > { %v687_v1 = vadd.f32 %v679_v60, %v660_v62  ;;  %v662_v0 = vpop.f32.mrb[5].mxu1 }
 0x209   : > { %v688_v3 = vadd.f32 %v680_v61, %v662_v0  ;;  %v664_v4 = vpop.f32.mrb[6].mxu1 }
 0x20a   : > { %695 = vst [vmem:[%s271_s13] sm:$0xff] %v687_v1  ;;  %v689_v5 = vadd.f32 %v681_v63, %v664_v4  ;;  %v666_v6 = vpop.f32.mrb[7].mxu1 }
 0x20b   : > { %696 = vst [vmem:[%s271_s13 + $0x8] sm:$0xff] %v688_v3  ;;  %v690_v7 = vadd.f32 %v682_v2, %v666_v6 }
 0x20c   : > { %697 = vst [vmem:[%s271_s13 + $0x10] sm:$0xff] %v689_v5 }
 0x20d   : > { %698 = vst [vmem:[%s271_s13 + $0x18] sm:$0xff] %v690_v7 }
 0x20f   : > { %v670_v10 = vpop.f32.mrb[8].mxu1 }
 0x210   : > { %v691_v12 = vadd.f32 %v683_v8, %v670_v10  ;;  %v672_v13 = vpop.f32.mrb[9].mxu1 }
 0x211   : > { %v692_v15 = vadd.f32 %v684_v9, %v672_v13  ;;  %v674_v16 = vpop.f32.mrb[10].mxu1 }
 0x212   : > { %699 = vst [vmem:[%s271_s13 + $0x20] sm:$0xff] %v691_v12  ;;  %v693_v17 = vadd.f32 %v685_v11, %v674_v16  ;;  %v676_v18 = vpop.f32.mrb[11].mxu1 }
 0x213   : > { %700 = vst [vmem:[%s271_s13 + $0x28] sm:$0xff] %v692_v15  ;;  %v694_v19 = vadd.f32 %v686_v14, %v676_v18 }
 0x214   : > { %701 = vst [vmem:[%s271_s13 + $0x30] sm:$0xff] %v693_v17 }
 0x215   : > { %702 = vst [vmem:[%s271_s13 + $0x38] sm:$0xff] %v694_v19 }
 0x216 PF: > { %s14_s17 = sadd.s32 1, %s978_s17   ;;  %s1107_s15 = smov %s974_s16 }
 0x217   : > { %p11_p5 = scmp.ge.s32.totalorder %s14_s17, 4   ;;  %s1108_s16 = smov %s1110_s18 }
 0x219   :  { %13 = sbr.rel (!%p11_p5) target bundleno = 2 (0x2), region = 69 }

</bundles_post_ra>
